<compile_context>
chip_gen: v6e
topology: v6e:2x2x1
jax: 0.10.0
libtpu: 0.0.40
codegen_flags: <defaults>
</compile_context>

<pallas_src>
import jax
import jax.numpy as jnp
from jax.experimental import pallas as pl
from jax.experimental.pallas import tpu as pltpu


def _round_up(x, m):
    return (x + m - 1) // m * m


# ----------------------------------------------------------------------------
# Kernel
# ----------------------------------------------------------------------------
def _pointnet_kernel(x_ref, w1_ref, wmlp_ref, tmlp_ref, w5_ref, t5_ref,
                     w6_ref, t6_ref, w7_ref, b7_ref, out_ref, mx_ref):
    """Fused point-MLP + max-pool + classifier head for one (batch, tile)."""
    k = pl.program_id(1)

    @pl.when(k == 0)
    def _init():
        # Zero init is only valid because conv5 output is post-ReLU (>= 0);
        # if the final activation ever changes, switch to -inf + lane masking.
        mx_ref[...] = jnp.zeros_like(mx_ref)

    x = x_ref[0]                                   # (TILE_N, 8) bf16, ch 3->8 zero-padded

    # conv1 (+ folded bn1 scale) as an MXU matmul; shift + ReLU on the VPU.
    y = jnp.dot(x, w1_ref[...], preferred_element_type=jnp.float32)   # (TILE_N, 128)
    h = jnp.maximum(y + tmlp_ref[0:1, :], 0.0)

    # conv2..conv4: bf16 MXU matmuls (BN scale pre-folded), shift + ReLU.
    for li in range(3):
        y = jnp.dot(h.astype(jnp.bfloat16), wmlp_ref[li],
                    preferred_element_type=jnp.float32)
        h = jnp.maximum(y + tmlp_ref[li + 1:li + 2, :], 0.0)

    # conv5 + bn5(shift) + relu -> (TILE_N, EMB_PAD)
    y = jnp.dot(h.astype(jnp.bfloat16), w5_ref[...],
                preferred_element_type=jnp.float32)
    h = jnp.maximum(y + t5_ref[...], 0.0)

    # running adaptive_max_pool1d over the point axis
    mx_ref[...] = jnp.maximum(mx_ref[...], jnp.max(h, axis=0, keepdims=True))

    # fused classifier head on the last point tile of this batch row
    @pl.when(k == pl.num_programs(1) - 1)
    def _head():
        f = mx_ref[...]                                            # (1, EMB_PAD)
        g = jnp.dot(f.astype(jnp.bfloat16), w6_ref[...],
                    preferred_element_type=jnp.float32)            # (1, 512)
        g = jnp.maximum(g + t6_ref[...], 0.0)
        # TODO(synk): nn.Dropout() is identity in eval mode; training-mode
        # dropout (p=0.5 Bernoulli mask) is not implemented here.
        logits = jnp.dot(g.astype(jnp.bfloat16), w7_ref[...],
                         preferred_element_type=jnp.float32) + b7_ref[...]
        out_ref[0] = logits                                        # (1, OUT_PAD)


# ----------------------------------------------------------------------------
# Wrapper
# ----------------------------------------------------------------------------
def pointnet_forward(x_bcn, params, *, tile_n=2048):
    """x_bcn: (B, 3, N) float32 (PyTorch NCW layout). Returns (B, output_channels)."""
    B, cin, N = x_bcn.shape
    assert cin == 3
    emb = params['w5'].shape[1]
    out_ch = params['w7'].shape[1]

    C = 128                                   # padded lane width for 64/128 channels
    CIN_PAD = 8                               # conv1 input channels padded 3 -> 8
    EMB_PAD = _round_up(emb, 128)
    OUT_PAD = _round_up(out_ch, 128)

    f32, bf16 = jnp.float32, jnp.bfloat16

    # --- input: channels to lanes, pad points/channels, pre-cast to bf16 -----
    # TODO(synk): the transpose could be dropped entirely by feeding (B,3,N)
    # blocks and transposing in-kernel; kept host-side here for simplicity
    # since the kernel is compute-bound.
    x = jnp.transpose(x_bcn, (0, 2, 1)).astype(f32)         # (B, N, 3)
    TILE_N = min(tile_n, _round_up(N, 8))
    N_pad = _round_up(N, TILE_N)
    if N_pad != N:
        # replicate the last point; duplicates cannot change the max-pool
        x = jnp.pad(x, ((0, 0), (0, N_pad - N), (0, 0)), mode='edge')
    x8 = jnp.pad(x, ((0, 0), (0, 0), (0, CIN_PAD - 3))).astype(bf16)  # (B, Np, 8)
    KT = N_pad // TILE_N

    # --- fold BN scale into weights, pack shifts into lane-dense slabs -------
    def pad2(w, rows, cols):
        return jnp.pad(w, ((0, rows - w.shape[0]), (0, cols - w.shape[1])))

    def pad_row(v, cols):
        v = v.reshape(1, -1)
        return jnp.pad(v, ((0, 0), (0, cols - v.shape[1])))

    w1f = params['w1'] * params['s1']                        # (3, 64) * (1, 64)
    w2f = params['w2'] * params['s2']
    w3f = params['w3'] * params['s3']
    w4f = params['w4'] * params['s4']
    w5f = params['w5'] * params['s5']
    w6f = params['w6'] * params['s6']

    w1p = pad2(w1f, CIN_PAD, C).astype(bf16)                 # (8, 128)
    wmlp = jnp.stack([pad2(w2f, C, C),
                      pad2(w3f, C, C),
                      pad2(w4f, C, C)]).astype(bf16)         # (3, 128, 128)
    tmlp = jnp.concatenate([pad_row(params['t1'], C),
                            pad_row(params['t2'], C),
                            pad_row(params['t3'], C),
                            pad_row(params['t4'], C),
                            jnp.zeros((4, C), f32)], axis=0)  # (8, 128)

    w5p = pad2(w5f, C, EMB_PAD).astype(bf16)                  # (128, EMBp)
    t5p = pad_row(params['t5'], EMB_PAD).astype(f32)          # (1, EMBp)

    w6p = pad2(w6f, EMB_PAD, 512).astype(bf16)                # (EMBp, 512)
    t6p = params['t6'].reshape(1, 512).astype(f32)            # (1, 512)

    w7p = pad2(params['w7'], 512, OUT_PAD).astype(bf16)       # (512, OUTp)
    b7p = pad_row(params['b7'], OUT_PAD).astype(f32)          # (1, OUTp)

    def full(a):
        # Constant index_map: same block every grid step (no re-fetch needed).
        return pl.BlockSpec(a.shape, lambda b, k, n=a.ndim: (0,) * n)

    out = pl.pallas_call(
        _pointnet_kernel,
        out_shape=jax.ShapeDtypeStruct((B, 1, OUT_PAD), jnp.float32),
        grid=(B, KT),
        in_specs=[pl.BlockSpec((1, TILE_N, CIN_PAD), lambda b, k: (b, k, 0)),
                  full(w1p), full(wmlp), full(tmlp), full(w5p), full(t5p),
                  full(w6p), full(t6p), full(w7p), full(b7p)],
        out_specs=pl.BlockSpec((1, 1, OUT_PAD), lambda b, k: (b, 0, 0)),
        scratch_shapes=[pltpu.VMEM((1, EMB_PAD), jnp.float32)],
        compiler_params=pltpu.CompilerParams(
            dimension_semantics=("parallel", "arbitrary"),
            vmem_limit_bytes=48 * 1024 * 1024),
    )(x8, w1p, wmlp, tmlp, w5p, t5p, w6p, t6p, w7p, b7p)

    return out.reshape(B, OUT_PAD)[:, :out_ch]


# ----------------------------------------------------------------------------
# Pure-JAX reference (same bf16 matmul inputs, unfolded BN) for a sanity check
# ----------------------------------------------------------------------------
def _reference_forward(x_bcn, params):
    bf16 = jnp.bfloat16
    x = jnp.transpose(x_bcn, (0, 2, 1)).astype(jnp.float32)        # (B, N, 3)

    def bn_relu(y, s, t):
        return jnp.maximum(y * s + t, 0.0)

    def mm(a, w):
        return jnp.einsum('bnc,cd->bnd', a.astype(bf16), w.astype(bf16),
                          preferred_element_type=jnp.float32)

    h = bn_relu(mm(x, params['w1']), params['s1'], params['t1'])
    for i in (2, 3, 4, 5):
        h = bn_relu(mm(h, params[f'w{i}']), params[f's{i}'], params[f't{i}'])
    f = jnp.max(h, axis=1)                                          # (B, emb)
    g = jnp.maximum(
        jnp.dot(f.astype(bf16), params['w6'].astype(bf16),
                preferred_element_type=jnp.float32) * params['s6'] + params['t6'],
        0.0)
    return (jnp.dot(g.astype(bf16), params['w7'].astype(bf16),
                    preferred_element_type=jnp.float32) + params['b7'])


# ----------------------------------------------------------------------------
# Deterministic parameter construction (synthetic weights; no checkpoint load)
# ----------------------------------------------------------------------------
def make_params(key, emb_dims=64, output_channels=40):
    dims = [(3, 64), (64, 64), (64, 64), (64, 128), (128, emb_dims)]
    params = {}
    keys = jax.random.split(key, 32)
    ki = 0

    def folded_bn(c, k1, k2, k3):
        gamma = 1.0 + 0.1 * jax.random.normal(k1, (1, c), jnp.float32)
        beta = 0.1 * jax.random.normal(k2, (1, c), jnp.float32)
        mean = 0.1 * jax.random.normal(k3, (1, c), jnp.float32)
        var = jnp.ones((1, c), jnp.float32)
        scale = gamma / jnp.sqrt(var + 1e-5)
        shift = beta - mean * scale
        return scale, shift

    for li, (cin, cout) in enumerate(dims, start=1):
        params[f'w{li}'] = (jax.random.normal(keys[ki], (cin, cout), jnp.float32)
                            * (1.0 / jnp.sqrt(cin)))
        s, t = folded_bn(cout, keys[ki + 1], keys[ki + 2], keys[ki + 3])
        params[f's{li}'], params[f't{li}'] = s, t
        ki += 4

    params['w6'] = (jax.random.normal(keys[ki], (emb_dims, 512), jnp.float32)
                    * (1.0 / jnp.sqrt(emb_dims)))
    s6, t6 = folded_bn(512, keys[ki + 1], keys[ki + 2], keys[ki + 3])
    params['s6'], params['t6'] = s6, t6
    ki += 4
    params['w7'] = (jax.random.normal(keys[ki], (512, output_channels), jnp.float32)
                    * (1.0 / jnp.sqrt(512.0)))
    params['b7'] = 0.1 * jax.random.normal(keys[ki + 1], (1, output_channels),
                                           jnp.float32)
    return params


# ----------------------------------------------------------------------------
if __name__ == "__main__":
    key = jax.random.PRNGKey(0)
    k_param, k_x = jax.random.split(key)

    B, N = 2, 16                      # small batch, 16 points
    EMB, OUT = 64, 40                 # args.emb_dims (small), output_channels

    params = make_params(k_param, emb_dims=EMB, output_channels=OUT)
    x = jax.random.normal(k_x, (B, 3, N), jnp.float32)   # PyTorch NCW input

    fwd = jax.jit(lambda xx: pointnet_forward(xx, params))
    logits = fwd(x)
    jax.block_until_ready(logits)

    assert logits.shape == (B, OUT), logits.shape
    assert bool(jnp.all(jnp.isfinite(logits)))

    ref = _reference_forward(x, params)
    max_err = float(jnp.max(jnp.abs(logits - ref)))
    # kernel folds BN scale into bf16 weights; reference scales in f32 -> small
    # extra rounding difference on top of bf16 matmul error.
    assert max_err < 1e-1, f"mismatch vs reference: {max_err}"

    print("KERNEL_OK")
</pallas_src>

<mosaic_0001>
module attributes {stable_mosaic.version = 11 : i64} {
  func.func @_pointnet_kernel(%arg0: i32, %arg1: i32, %arg2: memref<1x16x8xbf16, #tpu.memory_space<vmem>>, %arg3: memref<8x128xbf16, #tpu.memory_space<vmem>>, %arg4: memref<3x128x128xbf16, #tpu.memory_space<vmem>>, %arg5: memref<8x128xf32, #tpu.memory_space<vmem>>, %arg6: memref<128x128xbf16, #tpu.memory_space<vmem>>, %arg7: memref<1x128xf32, #tpu.memory_space<vmem>>, %arg8: memref<128x512xbf16, #tpu.memory_space<vmem>>, %arg9: memref<1x512xf32, #tpu.memory_space<vmem>>, %arg10: memref<512x128xbf16, #tpu.memory_space<vmem>>, %arg11: memref<1x128xf32, #tpu.memory_space<vmem>>, %arg12: memref<1x1x128xf32, #tpu.memory_space<vmem>>, %arg13: memref<1x128xf32, #tpu.memory_space<vmem>>) attributes {dimension_semantics = [#tpu.dimension_semantics<parallel>, #tpu.dimension_semantics<arbitrary>], iteration_bounds = array<i64: 2, 1>, scalar_prefetch = 0 : i64, scratch_operands = 1 : i64, tpu.core_type = #tpu.core_type<tc>, window_params = [{transform_indices = @transform_0, window_bounds = array<i64: 1, 16, 8>}, {pipeline_mode = #tpu.pipeline_mode<synchronous>, transform_indices = @transform_1, window_bounds = array<i64: 8, 128>}, {pipeline_mode = #tpu.pipeline_mode<synchronous>, transform_indices = @transform_2, window_bounds = array<i64: 3, 128, 128>}, {pipeline_mode = #tpu.pipeline_mode<synchronous>, transform_indices = @transform_3, window_bounds = array<i64: 8, 128>}, {pipeline_mode = #tpu.pipeline_mode<synchronous>, transform_indices = @transform_4, window_bounds = array<i64: 128, 128>}, {pipeline_mode = #tpu.pipeline_mode<synchronous>, transform_indices = @transform_5, window_bounds = array<i64: 1, 128>}, {pipeline_mode = #tpu.pipeline_mode<synchronous>, transform_indices = @transform_6, window_bounds = array<i64: 128, 512>}, {pipeline_mode = #tpu.pipeline_mode<synchronous>, transform_indices = @transform_7, window_bounds = array<i64: 1, 512>}, {pipeline_mode = #tpu.pipeline_mode<synchronous>, transform_indices = @transform_8, window_bounds = array<i64: 512, 128>}, {pipeline_mode = #tpu.pipeline_mode<synchronous>, transform_indices = @transform_9, window_bounds = array<i64: 1, 128>}, {transform_indices = @transform_10, window_bounds = array<i64: 1, 1, 128>}]} {
    %c0_i32 = arith.constant 0 : i32
    %0 = arith.cmpi eq, %arg1, %c0_i32 : i32
    %1 = arith.extui %0 : i1 to i32
    %c0_i32_0 = arith.constant 0 : i32
    %2 = arith.cmpi ne, %1, %c0_i32_0 : i32
    scf.if %2 {
      %cst_39 = arith.constant 0.000000e+00 : f32
      %55 = vector.broadcast %cst_39 : f32 to vector<1x128xf32>
      %c0_40 = arith.constant 0 : index
      %c0_41 = arith.constant 0 : index
      %56 = vector.load %arg13[%c0_40, %c0_41] : memref<1x128xf32, #tpu.memory_space<vmem>>, vector<1x128xf32>
      tpu.vector_store %arg13[%c0_40, %c0_41], %55 {strides = array<i32>} : memref<1x128xf32, #tpu.memory_space<vmem>>, vector<1x128xf32>,
    } else {
    }
    %c0 = arith.constant 0 : index
    %c0_1 = arith.constant 0 : index
    %c0_2 = arith.constant 0 : index
    %3 = vector.load %arg2[%c0, %c0_1, %c0_2] : memref<1x16x8xbf16, #tpu.memory_space<vmem>>, vector<1x16x8xbf16>
    %4 = vector.shape_cast %3 : vector<1x16x8xbf16> to vector<16x8xbf16>
    %c0_3 = arith.constant 0 : index
    %c0_4 = arith.constant 0 : index
    %5 = vector.load %arg3[%c0_3, %c0_4] : memref<8x128xbf16, #tpu.memory_space<vmem>>, vector<8x128xbf16>
    %cst = arith.constant dense<0.000000e+00> : vector<16x128xf32>
    %6 = tpu.matmul %4, %5, %cst {dimension_numbers = #tpu.dot_dimension_numbers<[1], [0], [0], [1], [0, 0, 1, 1], [], []>} : vector<16x8xbf16>, vector<8x128xbf16>, vector<16x128xf32> -> vector<16x128xf32>
    %c0_5 = arith.constant 0 : index
    %c0_6 = arith.constant 0 : index
    %7 = vector.load %arg5[%c0_5, %c0_6] : memref<8x128xf32, #tpu.memory_space<vmem>>, vector<1x128xf32>
    %8 = vector.broadcast %7 : vector<1x128xf32> to vector<16x128xf32>
    %9 = arith.addf %6, %8 : vector<16x128xf32>
    %cst_7 = arith.constant 0.000000e+00 : f32
    %10 = vector.broadcast %cst_7 : f32 to vector<16x128xf32>
    %11 = arith.maximumf %9, %10 : vector<16x128xf32>
    %12 = arith.truncf %11 : vector<16x128xf32> to vector<16x128xbf16>
    %c0_8 = arith.constant 0 : index
    %c0_9 = arith.constant 0 : index
    %c0_10 = arith.constant 0 : index
    %13 = vector.load %arg4[%c0_8, %c0_9, %c0_10] : memref<3x128x128xbf16, #tpu.memory_space<vmem>>, vector<1x128x128xbf16>
    %14 = vector.shape_cast %13 : vector<1x128x128xbf16> to vector<128x128xbf16>
    %cst_11 = arith.constant dense<0.000000e+00> : vector<16x128xf32>
    %15 = tpu.matmul %12, %14, %cst_11 {dimension_numbers = #tpu.dot_dimension_numbers<[1], [0], [0], [1], [0, 0, 1, 1], [], []>} : vector<16x128xbf16>, vector<128x128xbf16>, vector<16x128xf32> -> vector<16x128xf32>
    %c1 = arith.constant 1 : index
    %c0_12 = arith.constant 0 : index
    %16 = vector.load %arg5[%c1, %c0_12] : memref<8x128xf32, #tpu.memory_space<vmem>>, vector<1x128xf32>
    %17 = vector.broadcast %16 : vector<1x128xf32> to vector<16x128xf32>
    %18 = arith.addf %15, %17 : vector<16x128xf32>
    %cst_13 = arith.constant 0.000000e+00 : f32
    %19 = vector.broadcast %cst_13 : f32 to vector<16x128xf32>
    %20 = arith.maximumf %18, %19 : vector<16x128xf32>
    %21 = arith.truncf %20 : vector<16x128xf32> to vector<16x128xbf16>
    %c1_14 = arith.constant 1 : index
    %c0_15 = arith.constant 0 : index
    %c0_16 = arith.constant 0 : index
    %22 = vector.load %arg4[%c1_14, %c0_15, %c0_16] : memref<3x128x128xbf16, #tpu.memory_space<vmem>>, vector<1x128x128xbf16>
    %23 = vector.shape_cast %22 : vector<1x128x128xbf16> to vector<128x128xbf16>
    %cst_17 = arith.constant dense<0.000000e+00> : vector<16x128xf32>
    %24 = tpu.matmul %21, %23, %cst_17 {dimension_numbers = #tpu.dot_dimension_numbers<[1], [0], [0], [1], [0, 0, 1, 1], [], []>} : vector<16x128xbf16>, vector<128x128xbf16>, vector<16x128xf32> -> vector<16x128xf32>
    %c2 = arith.constant 2 : index
    %c0_18 = arith.constant 0 : index
    %25 = vector.load %arg5[%c2, %c0_18] : memref<8x128xf32, #tpu.memory_space<vmem>>, vector<1x128xf32>
    %26 = vector.broadcast %25 : vector<1x128xf32> to vector<16x128xf32>
    %27 = arith.addf %24, %26 : vector<16x128xf32>
    %cst_19 = arith.constant 0.000000e+00 : f32
    %28 = vector.broadcast %cst_19 : f32 to vector<16x128xf32>
    %29 = arith.maximumf %27, %28 : vector<16x128xf32>
    %30 = arith.truncf %29 : vector<16x128xf32> to vector<16x128xbf16>
    %c2_20 = arith.constant 2 : index
    %c0_21 = arith.constant 0 : index
    %c0_22 = arith.constant 0 : index
    %31 = vector.load %arg4[%c2_20, %c0_21, %c0_22] : memref<3x128x128xbf16, #tpu.memory_space<vmem>>, vector<1x128x128xbf16>
    %32 = vector.shape_cast %31 : vector<1x128x128xbf16> to vector<128x128xbf16>
    %cst_23 = arith.constant dense<0.000000e+00> : vector<16x128xf32>
    %33 = tpu.matmul %30, %32, %cst_23 {dimension_numbers = #tpu.dot_dimension_numbers<[1], [0], [0], [1], [0, 0, 1, 1], [], []>} : vector<16x128xbf16>, vector<128x128xbf16>, vector<16x128xf32> -> vector<16x128xf32>
    %c3 = arith.constant 3 : index
    %c0_24 = arith.constant 0 : index
    %34 = vector.load %arg5[%c3, %c0_24] : memref<8x128xf32, #tpu.memory_space<vmem>>, vector<1x128xf32>
    %35 = vector.broadcast %34 : vector<1x128xf32> to vector<16x128xf32>
    %36 = arith.addf %33, %35 : vector<16x128xf32>
    %cst_25 = arith.constant 0.000000e+00 : f32
    %37 = vector.broadcast %cst_25 : f32 to vector<16x128xf32>
    %38 = arith.maximumf %36, %37 : vector<16x128xf32>
    %39 = arith.truncf %38 : vector<16x128xf32> to vector<16x128xbf16>
    %c0_26 = arith.constant 0 : index
    %c0_27 = arith.constant 0 : index
    %40 = vector.load %arg6[%c0_26, %c0_27] : memref<128x128xbf16, #tpu.memory_space<vmem>>, vector<128x128xbf16>
    %cst_28 = arith.constant dense<0.000000e+00> : vector<16x128xf32>
    %41 = tpu.matmul %39, %40, %cst_28 {dimension_numbers = #tpu.dot_dimension_numbers<[1], [0], [0], [1], [0, 0, 1, 1], [], []>} : vector<16x128xbf16>, vector<128x128xbf16>, vector<16x128xf32> -> vector<16x128xf32>
    %c0_29 = arith.constant 0 : index
    %c0_30 = arith.constant 0 : index
    %42 = vector.load %arg7[%c0_29, %c0_30] : memref<1x128xf32, #tpu.memory_space<vmem>>, vector<1x128xf32>
    %43 = vector.broadcast %42 : vector<1x128xf32> to vector<16x128xf32>
    %44 = arith.addf %41, %43 : vector<16x128xf32>
    %cst_31 = arith.constant 0.000000e+00 : f32
    %45 = vector.broadcast %cst_31 : f32 to vector<16x128xf32>
    %46 = arith.maximumf %44, %45 : vector<16x128xf32>
    %c0_32 = arith.constant 0 : index
    %c0_33 = arith.constant 0 : index
    %47 = vector.load %arg13[%c0_32, %c0_33] : memref<1x128xf32, #tpu.memory_space<vmem>>, vector<1x128xf32>
    %cst_34 = arith.constant dense<0xFF800000> : vector<128xf32>
    %48 = vector.multi_reduction <maximumf>, %46, %cst_34 [0] : vector<16x128xf32> to vector<128xf32>
    %49 = vector.shape_cast %48 : vector<128xf32> to vector<1x128xf32>
    %50 = arith.maximumf %47, %49 : vector<1x128xf32>
    %c0_35 = arith.constant 0 : index
    %c0_36 = arith.constant 0 : index
    %51 = vector.load %arg13[%c0_35, %c0_36] : memref<1x128xf32, #tpu.memory_space<vmem>>, vector<1x128xf32>
    tpu.vector_store %arg13[%c0_35, %c0_36], %50 {strides = array<i32>} : memref<1x128xf32, #tpu.memory_space<vmem>>, vector<1x128xf32>,
    %c0_i32_37 = arith.constant 0 : i32
    %52 = arith.cmpi eq, %arg1, %c0_i32_37 : i32
    %53 = arith.extui %52 : i1 to i32
    %c0_i32_38 = arith.constant 0 : i32
    %54 = arith.cmpi ne, %53, %c0_i32_38 : i32
    scf.if %54 {
      %c0_39 = arith.constant 0 : index
      %c0_40 = arith.constant 0 : index
      %55 = vector.load %arg13[%c0_39, %c0_40] : memref<1x128xf32, #tpu.memory_space<vmem>>, vector<1x128xf32>
      %56 = arith.truncf %55 : vector<1x128xf32> to vector<1x128xbf16>
      %c0_41 = arith.constant 0 : index
      %c0_42 = arith.constant 0 : index
      %57 = vector.load %arg8[%c0_41, %c0_42] : memref<128x512xbf16, #tpu.memory_space<vmem>>, vector<128x512xbf16>
      %cst_43 = arith.constant dense<0.000000e+00> : vector<1x512xf32>
      %58 = tpu.matmul %56, %57, %cst_43 {dimension_numbers = #tpu.dot_dimension_numbers<[1], [0], [0], [1], [0, 0, 1, 1], [], []>} : vector<1x128xbf16>, vector<128x512xbf16>, vector<1x512xf32> -> vector<1x512xf32>
      %c0_44 = arith.constant 0 : index
      %c0_45 = arith.constant 0 : index
      %59 = vector.load %arg9[%c0_44, %c0_45] : memref<1x512xf32, #tpu.memory_space<vmem>>, vector<1x512xf32>
      %60 = arith.addf %58, %59 : vector<1x512xf32>
      %cst_46 = arith.constant 0.000000e+00 : f32
      %61 = vector.broadcast %cst_46 : f32 to vector<1x512xf32>
      %62 = arith.maximumf %60, %61 : vector<1x512xf32>
      %63 = arith.truncf %62 : vector<1x512xf32> to vector<1x512xbf16>
      %c0_47 = arith.constant 0 : index
      %c0_48 = arith.constant 0 : index
      %64 = vector.load %arg10[%c0_47, %c0_48] : memref<512x128xbf16, #tpu.memory_space<vmem>>, vector<512x128xbf16>
      %cst_49 = arith.constant dense<0.000000e+00> : vector<1x128xf32>
      %65 = tpu.matmul %63, %64, %cst_49 {dimension_numbers = #tpu.dot_dimension_numbers<[1], [0], [0], [1], [0, 0, 1, 1], [], []>} : vector<1x512xbf16>, vector<512x128xbf16>, vector<1x128xf32> -> vector<1x128xf32>
      %c0_50 = arith.constant 0 : index
      %c0_51 = arith.constant 0 : index
      %66 = vector.load %arg11[%c0_50, %c0_51] : memref<1x128xf32, #tpu.memory_space<vmem>>, vector<1x128xf32>
      %67 = arith.addf %65, %66 : vector<1x128xf32>
      %c0_52 = arith.constant 0 : index
      %c0_53 = arith.constant 0 : index
      %c0_54 = arith.constant 0 : index
      %68 = vector.load %arg12[%c0_52, %c0_53, %c0_54] : memref<1x1x128xf32, #tpu.memory_space<vmem>>, vector<1x1x128xf32>
      %69 = vector.shape_cast %68 : vector<1x1x128xf32> to vector<1x128xf32>
      %70 = vector.shape_cast %67 : vector<1x128xf32> to vector<1x1x128xf32>
      tpu.vector_store %arg12[%c0_52, %c0_53, %c0_54], %70 {strides = array<i32>} : memref<1x1x128xf32, #tpu.memory_space<vmem>>, vector<1x1x128xf32>,
    } else {
    }
    return
  }
  func.func @transform_0(%arg0: i32, %arg1: i32) -> (i32, i32, i32) {
    %c0_i32 = arith.constant 0 : i32
    %c0_i32_0 = arith.constant 0 : i32
    return %arg0, %arg1, %c0_i32 : i32, i32, i32
  }
  func.func @transform_1(%arg0: i32, %arg1: i32) -> (i32, i32) {
    %c0_i32 = arith.constant 0 : i32
    %c0_i32_0 = arith.constant 0 : i32
    %c0_i32_1 = arith.constant 0 : i32
    return %c0_i32, %c0_i32_0 : i32, i32
  }
  func.func @transform_2(%arg0: i32, %arg1: i32) -> (i32, i32, i32) {
    %c0_i32 = arith.constant 0 : i32
    %c0_i32_0 = arith.constant 0 : i32
    %c0_i32_1 = arith.constant 0 : i32
    %c0_i32_2 = arith.constant 0 : i32
    return %c0_i32, %c0_i32_0, %c0_i32_1 : i32, i32, i32
  }
  func.func @transform_3(%arg0: i32, %arg1: i32) -> (i32, i32) {
    %c0_i32 = arith.constant 0 : i32
    %c0_i32_0 = arith.constant 0 : i32
    %c0_i32_1 = arith.constant 0 : i32
    return %c0_i32, %c0_i32_0 : i32, i32
  }
  func.func @transform_4(%arg0: i32, %arg1: i32) -> (i32, i32) {
    %c0_i32 = arith.constant 0 : i32
    %c0_i32_0 = arith.constant 0 : i32
    %c0_i32_1 = arith.constant 0 : i32
    return %c0_i32, %c0_i32_0 : i32, i32
  }
  func.func @transform_5(%arg0: i32, %arg1: i32) -> (i32, i32) {
    %c0_i32 = arith.constant 0 : i32
    %c0_i32_0 = arith.constant 0 : i32
    %c0_i32_1 = arith.constant 0 : i32
    return %c0_i32, %c0_i32_0 : i32, i32
  }
  func.func @transform_6(%arg0: i32, %arg1: i32) -> (i32, i32) {
    %c0_i32 = arith.constant 0 : i32
    %c0_i32_0 = arith.constant 0 : i32
    %c0_i32_1 = arith.constant 0 : i32
    return %c0_i32, %c0_i32_0 : i32, i32
  }
  func.func @transform_7(%arg0: i32, %arg1: i32) -> (i32, i32) {
    %c0_i32 = arith.constant 0 : i32
    %c0_i32_0 = arith.constant 0 : i32
    %c0_i32_1 = arith.constant 0 : i32
    return %c0_i32, %c0_i32_0 : i32, i32
  }
  func.func @transform_8(%arg0: i32, %arg1: i32) -> (i32, i32) {
    %c0_i32 = arith.constant 0 : i32
    %c0_i32_0 = arith.constant 0 : i32
    %c0_i32_1 = arith.constant 0 : i32
    return %c0_i32, %c0_i32_0 : i32, i32
  }
  func.func @transform_9(%arg0: i32, %arg1: i32) -> (i32, i32) {
    %c0_i32 = arith.constant 0 : i32
    %c0_i32_0 = arith.constant 0 : i32
    %c0_i32_1 = arith.constant 0 : i32
    return %c0_i32, %c0_i32_0 : i32, i32
  }
  func.func @transform_10(%arg0: i32, %arg1: i32) -> (i32, i32, i32) {
    %c0_i32 = arith.constant 0 : i32
    %c0_i32_0 = arith.constant 0 : i32
    %c0_i32_1 = arith.constant 0 : i32
    return %arg0, %c0_i32, %c0_i32_0 : i32, i32, i32
  }
}

</mosaic_0001>

<bundles_post_ra>
// kernel: _lambda_.1
= control target key start
LH: loop header
LB: loop body
LE: loop exit
PB: predicated region body
PF: predicated region fallthrough
CT: control target
= control target key end

     0   :  { %s2828_s0 = inlined_call_operand.vmem [shape: bf16[2,16,8], index: 0, kind: input, shape index: {}]   ;;  %s2829_s1 = inlined_call_operand.vmem [shape: bf16[8,128], index: 1, kind: input, shape index: {}]   ;;  %s2830_s2 = inlined_call_operand.hbm [shape: bf16[3,128,128], index: 2, kind: input, shape index: {}]   ;;  %s2831_s3 = inlined_call_operand.hbm [shape: f32[8,128], index: 3, kind: input, shape index: {}]   ;;  %s2832_s4 = inlined_call_operand.vmem [shape: bf16[128,128], index: 4, kind: input, shape index: {}]   ;;  %s2833_s5 = inlined_call_operand.vmem [shape: f32[1,128], index: 5, kind: input, shape index: {}]   ;;  %s2834_s6 = inlined_call_operand.hbm [shape: bf16[128,512], index: 6, kind: input, shape index: {}]   ;;  %s2835_s7 = inlined_call_operand.hbm [shape: f32[1,512], index: 7, kind: input, shape index: {}]   ;;  %s2836_s8 = inlined_call_operand.hbm [shape: bf16[512,128], index: 8, kind: input, shape index: {}]   ;;  %s2837_s9 = inlined_call_operand.vmem [shape: f32[1,128], index: 9, kind: input, shape index: {}]   ;;  %s2838_s10 = inlined_call_operand.hbm [shape: f32[2,1,128], index: 10, kind: output, shape index: {}]  }
   0x1   :  { %2846 = sst [smem:[#allocation19_spill]] %s2831_s3 }
   0x2   :  { %2847 = sst [smem:[#allocation20_spill]] %s2835_s7 }
   0x3   :  { %15 = vsyncpa [#allocation4], 0 }
   0x4   :  { %16 = vsyncpa [#allocation7], 0 }
   0x5   :  { %17 = vsyncpa [#allocation10], 0 }
   0x6   :  { %18 = vsyncpa [#allocation5], 0 }
   0x7   :  { %20 = vsyncpa [#allocation5 + $0x1], 0  ;;  %s2575_s13 = smov 0   ;;  %s2577_s14 = smov 0  }
   0x8   :  { %s2579_s15 = smov 0   ;;  %s2581_s16 = smov 0  }
   0x9   :  { %s2583_s17 = smov 0   ;;  %s2585_s18 = smov 0  }
   0xa LB: > { %2848 = sst [smem:[#allocation17_spill]] %s2501_s17  ;;  %s1769_s19 = sadd.s32 4294967295, %s2505_s18   ;;  %s2505_s18 = sphi %s2585_s18, %s26_s18   ;;  %s2501_s17 = sphi %s2583_s17, %s2864_s17   ;;  %s2497_s16 = sphi %s2581_s16, %s2863_s16   ;;  %s2493_s15 = sphi %s2579_s15, %s2867_s15   ;;  %s2489_s14 = sphi %s2577_s14, %s2866_s14   ;;  %s2485_s13 = sphi %s2575_s13, %s2865_s13  }
   0xb   : > { %s1770_s20 = sadd.s32 4294967294, %s2505_s18   ;;  %s38_s21 = sadd.s32 1, %s2501_s17 }
   0xc   : > { %s262_s22 = sadd.s32 1, %s2493_s15  ;;  %p40_p0 = scmp.ge.s32.totalorder %s38_s21, 2 }
   0xd   : > { %p272_p1 = scmp.ne.s32.totalorder %s2493_s15, %s2489_s14  ;;  %p273_p2 = scmp.eq.s32.totalorder %s1769_s19, 1 }
   0xe   : > { %p278_p3 = scmp.ne.s32.totalorder %s2489_s14, %s2485_s13  ;;  %s2869_s21 = smov (%p40_p0, %s38_s21), 0 }
   0xf   : > { %2849 = sst [smem:[#allocation18_spill]] %s2869_s21  ;;  %p2615_p4 = por %p273_p2, %p272_p1 }
  0x10   : > { %p279_p5 = scmp.eq.s32.totalorder %s1770_s20, 1  ;;  %s259_s24 = ssub.s32 %s2501_s17, %s2869_s21 }
  0x11   : > { %s2850_s23 = scalar_select %p2615_p4, 1, 0 }
  0x12   : > { %p1771_p6 = scmp.ge.s32.totalorder %s2505_s18, 1  ;;  %p260_p7 = scmp.eq.s32.totalorder %s259_s24, 0 }
  0x13   : > { %p2622_p8 = por %p279_p5, %p278_p3  ;;  %p286_p9 = scmp.lt.s32.totalorder %s2505_s18, 3 }
  0x14   : > { %s2628_s26 = scalar_select %p260_p7, %s2493_s15, %s262_s22  }
  0x15   : > { %s2851_s25 = scalar_select %p2622_p8, 1, 0 }
  0x16   : > { %p2630_p10 = pnand %p1771_p6, %p286_p9  ;;  %p2634_p11 = scmp.eq.s32.totalorder %s1769_s19, 0 }
  0x17   : > { %s2507_s29 = smov [#allocation6]   ;;  %s2508_s11 = smov [#allocation9]  }
  0x18   : > { %s2852_s27 = scalar_select %p2630_p10, 1, 0 }
  0x19   : > { %s2853_s28 = scalar_select %p2634_p11, 1, 0 }
  0x1a   : > { %p2083_p12 = pneg %p2630_p10  ;;  %s315_s30 = sshll.u32 %s2507_s29, 4  ;;  %s316_s30 = int_to_ptr.vmem [resolvable:$true] %s315_s30 }
  0x1b   : > { %s345_s12 = sshll.u32 %s2508_s11, 4  ;;  %s2298_s22 = scalar_lea.vmem %s316_s30, 128  ;;  %s346_s12 = int_to_ptr.vmem [resolvable:$true] %s345_s12 }
  0x1c   : > { %p2642_p13 = pnand %p2634_p11, %p2083_p12  ;;  %p2299_p1 = scmp.ne.s32.totalorder %s316_s30, %s2298_s22 }
  0x1d   : > { %p2306_p5 = scmp.lt.s32.totalorder %s316_s30, %s316_s30  ;;  %p2307_p6 = scmp.lt.s32.totalorder %s2298_s22, %s2298_s22 }
  0x1e   : > { %p2648_p0 = pneg %p2642_p13 }
  0x1f   : > { %p2308_p7 = por %p2307_p6, %p2306_p5 }
  0x20   : > { %p2301_p2 = pnand %p2299_p1, %p2648_p0 }
  0x22   : > { %p2302_p3 = pneg %p2301_p2 }
  0x24   : > { %p2309_p9 = pnand %p2308_p7, %p2302_p3 }
  0x26   : > { %2312 = shalt.err (!%p2309_p9)
}
  0x27   : > { %s2856_s3 = sld [smem:[#allocation19_spill]]  ;;  %s2324_s11 = scalar_lea.vmem %s346_s12, 64 }
  0x28   : > { %p2325_p12 = scmp.ne.s32.totalorder %s346_s12, %s2324_s11  ;;  %p2332_p11 = scmp.lt.s32.totalorder %s346_s12, %s346_s12 }
  0x29   : > { %p2333_p1 = scmp.lt.s32.totalorder %s2324_s11, %s2324_s11 }
  0x2a   : > { %p2327_p8 = pnand %p2325_p12, %p2648_p0 }
  0x2b   : > { %p2334_p2 = por %p2333_p1, %p2332_p11 }
  0x2c   : > { %p2328_p4 = pneg %p2327_p8 }
  0x2d   : > { %2089 = dma.hbm_to_vmem [thread:$0]  (!%p2642_p13), %s2856_s3, 128, %s316_s30, [#allocation7]  }
  0x2e   : > { %p2335_p10 = pnand %p2334_p2, %p2328_p4 }
  0x30   : > { %2338 = shalt.err (!%p2335_p10)
}
  0x31   : > { %s2857_s7 = sld [smem:[#allocation20_spill]]  ;;  %s2509_s24 = smov [#allocation3]  }
  0x32   : > { %s301_s29 = sshll.u32 %s2509_s24, 4  ;;  %s302_s29 = int_to_ptr.vmem [resolvable:$true] %s301_s29 }
  0x33   : > { %s2350_s30 = scalar_lea.vmem %s302_s29, 3072  ;;  %p2358_p6 = scmp.lt.s32.totalorder %s302_s29, %s302_s29 }
  0x34   : > { %p2351_p3 = scmp.ne.s32.totalorder %s302_s29, %s2350_s30  ;;  %p2359_p7 = scmp.lt.s32.totalorder %s2350_s30, %s2350_s30 }
  0x36   : > { %p2353_p5 = pnand %p2351_p3, %p2648_p0  ;;  %p2360_p11 = por %p2359_p7, %p2358_p6 }
  0x37   : > { %2095 = dma.hbm_to_vmem [thread:$0]  (!%p2642_p13), %s2857_s7, 64, %s346_s12, [#allocation10]  }
  0x38   : > { %p2354_p8 = pneg %p2353_p5 }
  0x3a   : > { %p2361_p4 = pnand %p2360_p11, %p2354_p8 }
  0x3c   : > { %2364 = shalt.err (!%p2361_p4)
}
  0x3d   : > { %s2845_s11 = smov 64   ;;  %s2511_s3 = smov 4  }
  0x3e   : > { %2086 = dma.hbm_to_vmem [thread:$0]  (!%p2642_p13), %s2830_s2, 3072, %s302_s29, [#allocation4], %s2845_s11, %s2845_s11, %s2511_s3  }
  0x3f   : > { %s2512_s22 = smov [#allocation8]  }
  0x40   : > { %s331_s24 = sshll.u32 %s2512_s22, 4  ;;  %s332_s24 = int_to_ptr.vmem [resolvable:$true] %s331_s24 }
  0x41   : > { %s2376_s7 = scalar_lea.vmem %s332_s24, 4096  ;;  %p2384_p1 = scmp.lt.s32.totalorder %s332_s24, %s332_s24 }
  0x42   : > { %p2377_p10 = scmp.ne.s32.totalorder %s332_s24, %s2376_s7  ;;  %p2385_p2 = scmp.lt.s32.totalorder %s2376_s7, %s2376_s7 }
  0x44   : > { %p2379_p9 = pnand %p2377_p10, %p2648_p0  ;;  %p2386_p3 = por %p2385_p2, %p2384_p1 }
  0x46   : > { %p2380_p12 = pneg %p2379_p9 }
  0x48   : > { %p2387_p5 = pnand %p2386_p3, %p2380_p12 }
  0x4a   : > { %2390 = shalt.err (!%p2387_p5)
}
  0x4b   : > { %s2513_s30 = smov 256   ;;  %s2514_s17 = smov 16  }
  0x4c   : > { %2092 = dma.hbm_to_vmem [thread:$0]  (!%p2642_p13), %s2834_s6, 4096, %s332_s24, [#allocation7], %s2513_s30, %s2513_s30, %s2514_s17  }
  0x4d   : > { %s2515_s12 = smov [#allocation11]  }
  0x4e   : > { %s355_s22 = sshll.u32 %s2515_s12, 4  ;;  %s356_s22 = int_to_ptr.vmem [resolvable:$true] %s355_s22 }
  0x4f   : > { %s2402_s11 = scalar_lea.vmem %s356_s22, 4096  ;;  %p2410_p11 = scmp.lt.s32.totalorder %s356_s22, %s356_s22 }
  0x50   : > { %p2403_p8 = scmp.ne.s32.totalorder %s356_s22, %s2402_s11  ;;  %p2411_p4 = scmp.lt.s32.totalorder %s2402_s11, %s2402_s11 }
  0x52   : > { %p2405_p6 = pnand %p2403_p8, %p2648_p0  ;;  %p2412_p10 = por %p2411_p4, %p2410_p11 }
  0x54   : > { %p2406_p7 = pneg %p2405_p6 }
  0x56   : > { %p2413_p9 = pnand %p2412_p10, %p2406_p7 }
  0x58   : > { %2416 = shalt.err (!%p2413_p9)
}
  0x59   : > { %s2858_s7 = smov 64   ;;  %p2859_p12 = scmp.ne.s32.totalorder %s2852_s27, 0 }
  0x5a   : > { %2098 = dma.hbm_to_vmem [thread:$0]  (!%p2642_p13), %s2836_s8, 4096, %s356_s22, [#allocation10], %s2858_s7, %s2858_s7, %s2511_s3  }
  0x5b   : > { %387 = sbr.rel (%p2859_p12) target bundleno = 1563 (0x61b), region = 60  ;;  %p2860_p0 = scmp.ne.s32.totalorder (!%p2859_p12), %s2853_s28, 0 }
  0x60   : > { %2468 = dma.done.wait (%p2860_p0), [#allocation4], 3072  }
  0x61   : > { %2470 = vsyncadd (%p2860_p0), [#allocation4], 4294964224 }
  0x62   : > { %2472 = dma.done.wait (%p2860_p0), [#allocation7], 4224  }
  0x63   : > { %2474 = vsyncadd (%p2860_p0), [#allocation7], 4294963072 }
  0x64   : > { %2476 = dma.done.wait (%p2860_p0), [#allocation10], 4160  }
  0x65   : > { %2478 = vsyncadd (%p2860_p0), [#allocation10], 4294963136  ;;  %p445_p13 = scmp.lt.s32.totalorder %s2497_s16, 1  ;;  %v2516_v0 = vmov 0.0   ;;  %vm2517_vm0 = vmmov 0   ;;  %vm477_vm1 = vcmask 1043456  }
  0x66   : > { %1975 = vmatprep.subr.bf16.mxu0 %v2516_v0  ;;  %459 = vst [vmem:[#allocation2] sm:$0x1] %v2516_v0  ;;  %1977 = vmatprep.mubr.msk.bf16.mxu0 %vm2517_vm0, %v2516_v0  ;;  %v462_v1 = vld [vmem:[%s2829_s1] sm:$0xf]  ;;  %vm473_vm2 = vcmask 64512   ;;  %v2176_v5 = vld [vmem:[#allocation3 + $0x30] sm:$0xff]  }
  0x67   : > { %s446_s3 = scalar_select %p445_p13, %s2497_s16, 1  ;;  %1981 = vmatprep.subr.bf16.mxu1 %v2516_v0  ;;  %1997 = vmatprep.mubr.msk.bf16.mxu1 %vm2517_vm0, %v2516_v0  ;;  %v479_v2 = vsel %vm477_vm1, %v462_v1, 0  ;;  %v2175_v4 = vld [vmem:[#allocation3 + $0x38] sm:$0xff]   ;;  %v2177_v6 = vld [vmem:[#allocation3 + $0x28] sm:$0xff]   ;;  %v2178_v7 = vld [vmem:[#allocation3 + $0x20] sm:$0xff]  }
  0x68   : > { %1976 = vmatpush3.bf16.msra.mxu0 %v479_v2  ;;  %1982 = vmatpush3.bf16.msra.mxu1 %v2175_v4  ;;  %v2179_v8 = vld [vmem:[#allocation3 + $0x18] sm:$0xff]   ;;  %v2180_v9 = vld [vmem:[#allocation3 + $0x10] sm:$0xff]   ;;  %v2181_v10 = vld [vmem:[#allocation3 + $0x8] sm:$0xff]   ;;  %s442_s7 = sand.u32 1, %s2489_s14   ;;  %p2861_p2 = scmp.ne.s32.totalorder %s2850_s23, 0 }
  0x69   : > { %s1892_s27 = sshll.u32 %s446_s3, 3  ;;  %2001 = vmatprep.subr.bf16.mxu0 %v2516_v0  ;;  %1983 = vmatprep.subr.bf16.mxu1 %v2516_v0  ;;  %v2182_v11 = vld [vmem:[#allocation3] sm:$0xff]   ;;  %v2183_v12 = vld [vmem:[#allocation3 + $0x78] sm:$0xff]   ;;  %v2184_v13 = vld [vmem:[#allocation3 + $0x70] sm:$0xff]   ;;  %s1889_s3 = sshll.u32 %s2497_s16, 4 }
  0x6a   : > { %s452_s19 = scalar_lea.vmem %s2828_s0, %s1892_s27  ;;  %v2185_v14 = vld [vmem:[#allocation3 + $0x68] sm:$0xff]   ;;  %v2186_v15 = vld [vmem:[#allocation3 + $0x60] sm:$0xff]   ;;  %v2187_v16 = vld [vmem:[#allocation3 + $0x58] sm:$0xff]   ;;  %s443_s27 = scalar_lea.vmem [#allocation12], %s442_s7 }
  0x6b   : > { %v2174_v3 = vld [vmem:[%s452_s19] sm:$0xff]   ;;  %v2188_v27 = vld [vmem:[#allocation3 + $0x50] sm:$0xff]   ;;  %v2189_v28 = vld [vmem:[#allocation3 + $0x48] sm:$0xff]   ;;  %s1650_s28 = sshll.u32 %s443_s27, 4  ;;  %s1648_s11 = scalar_lea.hbm %s2838_s10, %s1889_s3  ;;  %s1651_s28 = int_to_ptr.vmem [resolvable:$true] %s1650_s28 }
  0x6c   : > { %1978 = vmatmul.mubr.msk.bf16.vlgmr.msra.gmra.mxu0 %vm473_vm2, %v2174_v3  ;;  %1984 = vmatpush3.bf16.msra.mxu1 %v2176_v5  ;;  %v1786_v17 = vld [vmem:[#allocation6] ss:$0 sm:$0xff]  ;;  %v2191_v30 = vld [vmem:[#allocation3 + $0xb8] sm:$0xff]   ;;  %v2192_v31 = vld [vmem:[#allocation3 + $0xb0] sm:$0xff]   ;;  %s1638_s24 = scalar_lea.sflag [#allocation5], %s442_s7  ;;  %s2417_s30 = scalar_lea.vmem %s1651_s28, 16 }
  0x6d   : > { %2017 = vmatprep.mubr.msk.bf16.mxu0 %vm2517_vm0, %v2516_v0  ;;  %1985 = vmatprep.subr.bf16.mxu1 %v2516_v0  ;;  %v2190_v29 = vld [vmem:[#allocation3 + $0x40] sm:$0xff]   ;;  %v2193_v32 = vld [vmem:[#allocation3 + $0xa8] sm:$0xff]   ;;  %v2195_v34 = vld [vmem:[#allocation3 + $0x98] sm:$0xff]   ;;  %p2418_p1 = scmp.ne.s32.totalorder %s1651_s28, %s2417_s30  ;;  %s2519_s16 = smov [#allocation12]  }
  0x6e   : > { %2002 = vmatpush3.bf16.msra.mxu0 %v2183_v12  ;;  %v2194_v33 = vld [vmem:[#allocation3 + $0xa0] sm:$0xff]   ;;  %v2196_v45 = vld [vmem:[#allocation3 + $0x90] sm:$0xff]   ;;  %v2197_v46 = vld [vmem:[#allocation3 + $0x88] sm:$0xff]   ;;  %s2421_s29 = sshll.u32 %s2519_s16, 4  ;;  %s2422_s29 = int_to_ptr.vmem [resolvable:$false] %s2421_s29 }
  0x6f   : > { %2003 = vmatprep.subr.bf16.mxu0 %v2516_v0  ;;  %v1789_v35 = vld [vmem:[#allocation6 + $0x1] ss:$0 sm:$0xff]  ;;  %v2199_v48 = vld [vmem:[%s2832_s4 + $0x38] sm:$0xff]   ;;  %v2200_v49 = vld [vmem:[%s2832_s4 + $0x30] sm:$0xff]   ;;  %p2419_p3 = pnand %p2418_p1, %p2861_p2  ;;  %s2423_s12 = scalar_lea.vmem %s2422_s29, 32 }
  0x70   : > { %1986 = vmatpush3.bf16.msra.mxu1 %v2177_v6  ;;  %v2198_v47 = vld [vmem:[#allocation3 + $0x80] sm:$0xff]   ;;  %v2203_v52 = vld [vmem:[%s2832_s4 + $0x18] sm:$0xff]   ;;  %v2204_v63 = vld [vmem:[%s2832_s4 + $0x10] sm:$0xff]   ;;  %p2424_p8 = scmp.lt.s32.totalorder %s1651_s28, %s2422_s29  ;;  %p2425_p6 = scmp.lt.s32.totalorder %s2423_s12, %s2417_s30 }
  0x71   : > { %1987 = vmatprep.subr.bf16.mxu1 %v2516_v0  ;;  %v2201_v50 = vld [vmem:[%s2832_s4 + $0x28] sm:$0xff]   ;;  %v2202_v51 = vld [vmem:[%s2832_s4 + $0x20] sm:$0xff]   ;;  %p2420_p5 = pneg %p2419_p3 }
  0x72   : > { %2004 = vmatpush3.bf16.msra.mxu0 %v2184_v13  ;;  %v1798_v53 = vld [vmem:[#allocation6 + $0x2] ss:$0 sm:$0xff]  ;;  %v2205_v1 = vld [vmem:[%s2832_s4 + $0x8] sm:$0xff]   ;;  %v1807_v3 = vld [vmem:[#allocation6 + $0x3] ss:$0 sm:$0xff]  ;;  %p2426_p7 = por %p2425_p6, %p2424_p8 }
  0x73   : > { %2005 = vmatprep.subr.bf16.mxu0 %v2516_v0  ;;  %v2206_v2 = vld [vmem:[%s2832_s4] sm:$0xff]  }
  0x74   : > { %1988 = vmatpush3.bf16.msra.mxu1 %v2178_v7  ;;  %v2209_v13 = vld [vmem:[#allocation8 + $0xe4] ss:$16 sps:$4 sm:$0xff]   ;;  %p2427_p11 = pnand %p2426_p7, %p2420_p5 }
  0x75   : > { %1989 = vmatprep.subr.bf16.mxu1 %v2516_v0 }
  0x76   : > { %2006 = vmatpush3.bf16.msra.mxu0 %v2185_v14  ;;  %v2212_v14 = vld [vmem:[#allocation8 + $0xec] ss:$16 sps:$4 sm:$0xff]  }
  0x77   : > { %2007 = vmatprep.subr.bf16.mxu0 %v2516_v0 }
  0x78   : > { %1990 = vmatpush3.bf16.msra.mxu1 %v2179_v8 }
  0x79   : > { %1991 = vmatprep.subr.bf16.mxu1 %v2516_v0 }
  0x7a   : > { %2008 = vmatpush3.bf16.msra.mxu0 %v2186_v15  ;;  %v2207_v15 = vld [vmem:[#allocation8 + $0xe0] ss:$16 sps:$4 sm:$0xff]  }
  0x7b   : > { %2009 = vmatprep.subr.bf16.mxu0 %v2516_v0 }
  0x7c   : > { %1992 = vmatpush3.bf16.msra.mxu1 %v2180_v9 }
  0x7d   : > { %1993 = vmatprep.subr.bf16.mxu1 %v2516_v0 }
  0x7e   : > { %2010 = vmatpush3.bf16.msra.mxu0 %v2187_v16  ;;  %v2215_v16 = vld [vmem:[#allocation8 + $0xc4] ss:$16 sps:$4 sm:$0xff]  }
  0x7f   : > { %2011 = vmatprep.subr.bf16.mxu0 %v2516_v0 }
  0x80   : > { %1994 = vmatpush3.bf16.msra.mxu1 %v2181_v10 }
  0x81   : > { %1995 = vmatprep.subr.bf16.mxu1 %v2516_v0 }
  0x82   : > { %2012 = vmatpush3.bf16.msra.mxu0 %v2188_v27  ;;  %v2228_v27 = vld [vmem:[#allocation8 + $0x88] ss:$16 sps:$4 sm:$0xff]  }
  0x83   : > { %2013 = vmatprep.subr.bf16.mxu0 %v2516_v0 }
  0x84   : > { %1996 = vmatpush3.bf16.msra.mxu1 %v2182_v11 }
  0x85   : > { %2021 = vmatprep.subr.bf16.mxu1 %v2516_v0 }
  0x86   : > { %2014 = vmatpush3.bf16.msra.mxu0 %v2189_v28  ;;  %v2233_v28 = vld [vmem:[#allocation8 + $0x64] ss:$16 sps:$4 sm:$0xff]  }
  0x87   : > { %2015 = vmatprep.subr.bf16.mxu0 %v2516_v0 }
  0x8a   : > { %2016 = vmatpush3.bf16.msra.mxu0 %v2190_v29  ;;  %v2236_v29 = vld [vmem:[#allocation8 + $0x6c] ss:$16 sps:$4 sm:$0xff]  }
  0x8b   : > { %2041 = vmatprep.subr.bf16.mxu0 %v2516_v0 }
 0x12c   : > { %v515_v18 = vpop.f32.mrf.mxu0 }
 0x12d   : > { %v516_v20 = vadd.f32 %v1786_v17, %v515_v18  ;;  %v2213_v18 = vld [vmem:[#allocation8 + $0xc0] ss:$16 sps:$4 sm:$0xff]  }
 0x12e   : > { %v1979_v19 = vpop.f32.mrf.mxu0 }
 0x12f   : > { %v522_v24 = vmax.f32 %v516_v20, 0.0  ;;  %v2216_v19 = vld [vmem:[#allocation8 + $0xc8] ss:$16 sps:$4 sm:$0xff]   ;;  %v2221_v20 = vld [vmem:[#allocation8 + $0xa4] ss:$16 sps:$4 sm:$0xff]  }
 0x130   : > { %v518_v21 = vpop.f32.mrf.mxu0 }
 0x131   : > { %v519_v22 = vadd.f32 %v1786_v17, %v518_v21  ;;  %v2218_v17 = vld [vmem:[#allocation8 + $0xcc] ss:$16 sps:$4 sm:$0xff]  }
 0x132   : > { %v1980_v23 = vpop.f32.mrf.mxu0  ;;  %v2224_v21 = vld [vmem:[#allocation8 + $0xac] ss:$16 sps:$4 sm:$0xff]  }
 0x133   : > { %v523_v25 = vmax.f32 %v519_v22, 0.0  ;;  %v2219_v22 = vld [vmem:[#allocation8 + $0xa0] ss:$16 sps:$4 sm:$0xff]   ;;  %v2222_v23 = vld [vmem:[#allocation8 + $0xa8] ss:$16 sps:$4 sm:$0xff]  }
 0x135   : > { %v524_v26 = vpack.c.bf16 %v523_v25, %v522_v24  ;;  %v2227_v24 = vld [vmem:[#allocation8 + $0x84] ss:$16 sps:$4 sm:$0xff]   ;;  %v2230_v25 = vld [vmem:[#allocation8 + $0x8c] ss:$16 sps:$4 sm:$0xff]  }
 0x137   : > { %1998 = vmatmul.mubr.bf16.vlgmr.msra.gmra.mxu1 %v524_v26  ;;  %v2225_v26 = vld [vmem:[#allocation8 + $0x80] ss:$16 sps:$4 sm:$0xff]  }
 0x138   : > { %2037 = vmatprep.mubr.msk.bf16.mxu1 %vm2517_vm0, %v2516_v0  ;;  %2022 = vmatpush3.bf16.msra.mxu1 %v2191_v30  ;;  %v2231_v30 = vld [vmem:[#allocation8 + $0x60] ss:$16 sps:$4 sm:$0xff]  }
 0x139   : > { %2023 = vmatprep.subr.bf16.mxu1 %v2516_v0 }
 0x13c   : > { %2024 = vmatpush3.bf16.msra.mxu1 %v2192_v31  ;;  %v2234_v31 = vld [vmem:[#allocation8 + $0x68] ss:$16 sps:$4 sm:$0xff]  }
 0x13d   : > { %2025 = vmatprep.subr.bf16.mxu1 %v2516_v0 }
 0x140   : > { %2026 = vmatpush3.bf16.msra.mxu1 %v2193_v32  ;;  %v2239_v32 = vld [vmem:[#allocation8 + $0x44] ss:$16 sps:$4 sm:$0xff]  }
 0x141   : > { %2027 = vmatprep.subr.bf16.mxu1 %v2516_v0 }
 0x144   : > { %2028 = vmatpush3.bf16.msra.mxu1 %v2194_v33  ;;  %v2242_v33 = vld [vmem:[#allocation8 + $0x4c] ss:$16 sps:$4 sm:$0xff]  }
 0x145   : > { %2029 = vmatprep.subr.bf16.mxu1 %v2516_v0 }
 0x148   : > { %2030 = vmatpush3.bf16.msra.mxu1 %v2195_v34  ;;  %v2237_v34 = vld [vmem:[#allocation8 + $0x40] ss:$16 sps:$4 sm:$0xff]  }
 0x149   : > { %2031 = vmatprep.subr.bf16.mxu1 %v2516_v0 }
 0x14c   : > { %2032 = vmatpush3.bf16.msra.mxu1 %v2196_v45  ;;  %v2255_v45 = vld [vmem:[#allocation11 + $0x78] sm:$0xff]  }
 0x14d   : > { %2033 = vmatprep.subr.bf16.mxu1 %v2516_v0 }
 0x150   : > { %2034 = vmatpush3.bf16.msra.mxu1 %v2197_v46  ;;  %v2256_v46 = vld [vmem:[#allocation11 + $0xf8] sm:$0xff]  }
 0x151   : > { %2035 = vmatprep.subr.bf16.mxu1 %v2516_v0 }
 0x154   : > { %2036 = vmatpush3.bf16.msra.mxu1 %v2198_v47  ;;  %v1816_v47 = vld [vmem:[%s2833_s5] ss:$0 sm:$0xff] }
 0x155   : > { %1209 = vmatprep.subr.bf16.mxu1 %v2209_v13  ;;  %v2266_v13 = vld [vmem:[#allocation11 + $0xa8] sm:$0xff]  }
 0x1f7   : > { %v628_v36 = vpop.f32.mrf.mxu1 }
 0x1f8   : > { %v629_v38 = vadd.f32 %v1789_v35, %v628_v36  ;;  %v2243_v36 = vld [vmem:[#allocation8 + $0x20] ss:$16 sps:$4 sm:$0xff]  }
 0x1f9   : > { %v1999_v37 = vpop.f32.mrf.mxu1 }
 0x1fa   : > { %v635_v42 = vmax.f32 %v629_v38, 0.0  ;;  %v2245_v37 = vld [vmem:[#allocation8 + $0x24] ss:$16 sps:$4 sm:$0xff]   ;;  %v2246_v38 = vld [vmem:[#allocation8 + $0x28] ss:$16 sps:$4 sm:$0xff]  }
 0x1fb   : > { %v631_v39 = vpop.f32.mrf.mxu1 }
 0x1fc   : > { %v632_v40 = vadd.f32 %v1789_v35, %v631_v39  ;;  %v2240_v35 = vld [vmem:[#allocation8 + $0x48] ss:$16 sps:$4 sm:$0xff]   ;;  %v2248_v39 = vld [vmem:[#allocation8 + $0x2c] ss:$16 sps:$4 sm:$0xff]  }
 0x1fd   : > { %v2000_v41 = vpop.f32.mrf.mxu1 }
 0x1fe   : > { %v636_v43 = vmax.f32 %v632_v40, 0.0  ;;  %v2251_v40 = vld [vmem:[#allocation8 + $0x4] ss:$16 sps:$4 sm:$0xff]   ;;  %v2254_v41 = vld [vmem:[#allocation8 + $0xc] ss:$16 sps:$4 sm:$0xff]  }
 0x200   : > { %v637_v44 = vpack.c.bf16 %v636_v43, %v635_v42  ;;  %v2249_v42 = vld [vmem:[#allocation8] ss:$16 sps:$4 sm:$0xff]   ;;  %v2252_v43 = vld [vmem:[#allocation8 + $0x8] ss:$16 sps:$4 sm:$0xff]  }
 0x202   : > { %2018 = vmatmul.mubr.bf16.vlgmr.msra.gmra.mxu0 %v637_v44  ;;  %v2518_v44 = vmov 0  }
 0x203   : > { %2057 = vmatprep.mubr.msk.bf16.mxu0 %vm2517_vm0, %v2516_v0  ;;  %2042 = vmatpush3.bf16.msra.mxu0 %v2199_v48 }
 0x204   : > { %2043 = vmatprep.subr.bf16.mxu0 %v2516_v0 }
 0x207   : > { %2044 = vmatpush3.bf16.msra.mxu0 %v2200_v49 }
 0x208   : > { %2045 = vmatprep.subr.bf16.mxu0 %v2516_v0 }
 0x20b   : > { %2046 = vmatpush3.bf16.msra.mxu0 %v2201_v50 }
 0x20c   : > { %2047 = vmatprep.subr.bf16.mxu0 %v2516_v0 }
 0x20f   : > { %2048 = vmatpush3.bf16.msra.mxu0 %v2202_v51 }
 0x210   : > { %2049 = vmatprep.subr.bf16.mxu0 %v2516_v0 }
 0x213   : > { %2050 = vmatpush3.bf16.msra.mxu0 %v2203_v52 }
 0x214   : > { %2051 = vmatprep.subr.bf16.mxu0 %v2516_v0 }
 0x217   : > { %2052 = vmatpush3.bf16.msra.mxu0 %v2204_v63 }
 0x218   : > { %2053 = vmatprep.subr.bf16.mxu0 %v2516_v0 }
 0x21b   : > { %2054 = vmatpush3.bf16.msra.mxu0 %v2205_v1 }
 0x21c   : > { %2055 = vmatprep.subr.bf16.mxu0 %v2516_v0  ;;  %v2210_v0 = vld [vmem:[#allocation8 + $0xe8] ss:$16 sps:$4 sm:$0xff]  }
 0x21f   : > { %2056 = vmatpush3.bf16.msra.mxu0 %v2206_v2 }
 0x220   : > { %1250 = vmatprep.subr.bf16.mxu0 %v2212_v14  ;;  %v2267_v14 = vld [vmem:[#allocation11 + $0x60] sm:$0xff]  }
 0x2c2   : > { %v742_v54 = vpop.f32.mrf.mxu0 }
 0x2c3   : > { %v743_v56 = vadd.f32 %v1798_v53, %v742_v54 }
 0x2c4   : > { %v2019_v55 = vpop.f32.mrf.mxu0 }
 0x2c5   : > { %v749_v60 = vmax.f32 %v743_v56, 0.0 }
 0x2c6   : > { %v745_v57 = vpop.f32.mrf.mxu0 }
 0x2c7   : > { %v746_v58 = vadd.f32 %v1798_v53, %v745_v57 }
 0x2c8   : > { %v2020_v59 = vpop.f32.mrf.mxu0 }
 0x2c9   : > { %v750_v61 = vmax.f32 %v746_v58, 0.0 }
 0x2cb   : > { %v751_v62 = vpack.c.bf16 %v750_v61, %v749_v60 }
 0x2cd   : > { %2038 = vmatmul.mubr.bf16.vlgmr.msra.gmra.mxu1 %v751_v62  ;;  %v980_v62 = vld [vmem:[#allocation2] sm:$0x1] }
 0x2ce   : > { %1210 = vmatpush1.bf16.msra.mxu1 %v2207_v15  ;;  %1241 = vmatprep.mubr.bf16.mxu1 %v2518_v44  ;;  %v2268_v15 = vld [vmem:[#allocation11 + $0xe0] sm:$0xff]  }
 0x2cf   : > { %1211 = vmatprep.subr.bf16.mxu1 %v2215_v16  ;;  %v2270_v16 = vld [vmem:[#allocation11 + $0xa0] sm:$0xff]  }
 0x2d2   : > { %1212 = vmatpush1.bf16.msra.mxu1 %v2213_v18  ;;  %v2272_v18 = vld [vmem:[#allocation11 + $0xd8] sm:$0xff]  }
 0x2d3   : > { %1213 = vmatprep.subr.bf16.mxu1 %v2221_v20  ;;  %v2274_v20 = vld [vmem:[#allocation11 + $0x98] sm:$0xff]  }
 0x2d6   : > { %1214 = vmatpush1.bf16.msra.mxu1 %v2219_v22  ;;  %v2276_v22 = vld [vmem:[#allocation11 + $0xd0] sm:$0xff]  }
 0x2d7   : > { %1215 = vmatprep.subr.bf16.mxu1 %v2227_v24  ;;  %v2278_v24 = vld [vmem:[#allocation11 + $0x90] sm:$0xff]  }
 0x2da   : > { %1216 = vmatpush1.bf16.msra.mxu1 %v2225_v26  ;;  %v2280_v26 = vld [vmem:[#allocation11 + $0xc8] sm:$0xff]  }
 0x2db   : > { %1217 = vmatprep.subr.bf16.mxu1 %v2233_v28  ;;  %v2282_v28 = vld [vmem:[#allocation11 + $0x88] sm:$0xff]  }
 0x2de   : > { %1218 = vmatpush1.bf16.msra.mxu1 %v2231_v30  ;;  %v2284_v30 = vld [vmem:[#allocation11 + $0xc0] sm:$0xff]  }
 0x2df   : > { %1219 = vmatprep.subr.bf16.mxu1 %v2239_v32  ;;  %v2286_v32 = vld [vmem:[#allocation11 + $0x80] sm:$0xff]  }
 0x2e2   : > { %1220 = vmatpush1.bf16.msra.mxu1 %v2237_v34 }
 0x2e3   : > { %1221 = vmatprep.subr.bf16.mxu1 %v2245_v37  ;;  %v1027_v37 = vld [vmem:[#allocation9] sm:$0xf] }
 0x2e6   : > { %1222 = vmatpush1.bf16.msra.mxu1 %v2243_v36 }
 0x2e7   : > { %1223 = vmatprep.subr.bf16.mxu1 %v2251_v40 }
 0x2ea   : > { %1224 = vmatpush1.bf16.msra.mxu1 %v2249_v42 }
 0x2eb   : > { %1931 = vmatprep.subr.bf16.mxu1 %v2255_v45 }
 0x38d   : > { %v856_v4 = vpop.f32.mrf.mxu1 }
 0x38e   : > { %v857_v6 = vadd.f32 %v1807_v3, %v856_v4  ;;  %v2258_v4 = vld [vmem:[#allocation11 + $0xb8] sm:$0xff]  }
 0x38f   : > { %v2039_v5 = vpop.f32.mrf.mxu1 }
 0x390   : > { %v863_v10 = vmax.f32 %v857_v6, 0.0  ;;  %v2259_v6 = vld [vmem:[#allocation11 + $0x70] sm:$0xff]  }
 0x391   : > { %v859_v7 = vpop.f32.mrf.mxu1 }
 0x392   : > { %v860_v8 = vadd.f32 %v1807_v3, %v859_v7  ;;  %v2257_v3 = vld [vmem:[#allocation11 + $0x38] sm:$0xff]   ;;  %v2260_v7 = vld [vmem:[#allocation11 + $0xf0] sm:$0xff]  }
 0x393   : > { %v2040_v9 = vpop.f32.mrf.mxu1 }
 0x394   : > { %v864_v11 = vmax.f32 %v860_v8, 0.0  ;;  %v2261_v8 = vld [vmem:[#allocation11 + $0x30] sm:$0xff]  }
 0x395   : > { %v2262_v9 = vld [vmem:[#allocation11 + $0xb0] sm:$0xff]  }
 0x396   : > { %v865_v12 = vpack.c.bf16 %v864_v11, %v863_v10  ;;  %v2263_v10 = vld [vmem:[#allocation11 + $0x68] sm:$0xff]  }
 0x397   : > { %v2264_v11 = vld [vmem:[#allocation11 + $0xe8] sm:$0xff]  }
 0x398   : > { %2058 = vmatmul.mubr.bf16.vlgmr.msra.gmra.mxu0 %v865_v12  ;;  %v2265_v12 = vld [vmem:[#allocation11 + $0x28] sm:$0xff]  }
 0x399   : > { %1251 = vmatpush1.bf16.msra.mxu0 %v2210_v0  ;;  %1282 = vmatprep.mubr.bf16.mxu0 %v2518_v44  ;;  %v2269_v0 = vld [vmem:[#allocation11 + $0x20] sm:$0xff]  }
 0x39a   : > { %1252 = vmatprep.subr.bf16.mxu0 %v2218_v17  ;;  %v2271_v17 = vld [vmem:[#allocation11 + $0x58] sm:$0xff]  }
 0x39d   : > { %1253 = vmatpush1.bf16.msra.mxu0 %v2216_v19  ;;  %v2273_v19 = vld [vmem:[#allocation11 + $0x18] sm:$0xff]  }
 0x39e   : > { %1254 = vmatprep.subr.bf16.mxu0 %v2224_v21  ;;  %v2275_v21 = vld [vmem:[#allocation11 + $0x50] sm:$0xff]  }
 0x3a1   : > { %1255 = vmatpush1.bf16.msra.mxu0 %v2222_v23  ;;  %v2277_v23 = vld [vmem:[#allocation11 + $0x10] sm:$0xff]  }
 0x3a2   : > { %1256 = vmatprep.subr.bf16.mxu0 %v2230_v25  ;;  %v2279_v25 = vld [vmem:[#allocation11 + $0x48] sm:$0xff]  }
 0x3a5   : > { %1257 = vmatpush1.bf16.msra.mxu0 %v2228_v27  ;;  %v2281_v27 = vld [vmem:[#allocation11 + $0x8] sm:$0xff]  }
 0x3a6   : > { %1258 = vmatprep.subr.bf16.mxu0 %v2236_v29  ;;  %v2283_v29 = vld [vmem:[#allocation11 + $0x40] sm:$0xff]  }
 0x3a9   : > { %1259 = vmatpush1.bf16.msra.mxu0 %v2234_v31  ;;  %v2285_v31 = vld [vmem:[#allocation11] sm:$0xff]  }
 0x3aa   : > { %1260 = vmatprep.subr.bf16.mxu0 %v2242_v33  ;;  %v1189_v33 = vlaneseq }
 0x3ac   : > { %v1190_v34 = vshrl.u32 %v1189_v33, 7 }
 0x3ad   : > { %1261 = vmatpush1.bf16.msra.mxu0 %v2240_v35 }
 0x3ae   : > { %1262 = vmatprep.subr.bf16.mxu0 %v2248_v39  ;;  %v1191_v35 = vsub.s32 0, %v1190_v34  ;;  %v1199_v36 = vsub.s32 2, %v1190_v34  ;;  %v1203_v39 = vsub.s32 3, %v1190_v34 }
 0x3b0   : > { %v1192_v40 = vrot.slane %v1027_v37, %v1191_v35 }
 0x3b1   : > { %1263 = vmatpush1.bf16.msra.mxu0 %v2246_v38  ;;  %v1195_v38 = vsub.s32 1, %v1190_v34 }
 0x3b2   : > { %1264 = vmatprep.subr.bf16.mxu0 %v2254_v41  ;;  %v1200_v41 = vrot.slane %v1027_v37, %v1199_v36 }
 0x3b3   : > { %v1196_v42 = vrot.slane %v1027_v37, %v1195_v38 }
 0x3b5   : > { %1265 = vmatpush1.bf16.msra.mxu0 %v2252_v43  ;;  %v1204_v43 = vrot.slane %v1027_v37, %v1203_v39 }
 0x3b6   : > { %1953 = vmatprep.subr.bf16.mxu0 %v2256_v46 }
 0x458   : > { %v971_v48 = vpop.f32.mrf.mxu0 }
 0x459   : > { %v972_v50 = vadd.f32 %v1816_v47, %v971_v48 }
 0x45a   : > { %v2059_v49 = vpop.f32.mrf.mxu0 }
 0x45b   : > { %v978_v54 = vmax.f32 %v972_v50, 0.0 }
 0x45c   : > { %v974_v51 = vpop.f32.mrf.mxu0 }
 0x45d   : > { %v975_v52 = vadd.f32 %v1816_v47, %v974_v51 }
 0x45e   : > { %v2060_v53 = vpop.f32.mrf.mxu0 }
 0x45f   : > { %v979_v55 = vmax.f32 %v975_v52, 0.0 }
 0x461   : > { %v981_v56 = vmax.f32 %v978_v54, %v979_v55 }
 0x463   : > { %v982_v57 = vrot.slane %v981_v56, 4 }
 0x465   : > { %v983_v58 = vmax.f32 %v981_v56, %v982_v57 }
 0x467   : > { %v984_v59 = vrot.slane %v983_v58, 2 }
 0x469   : > { %v985_v60 = vmax.f32 %v983_v58, %v984_v59 }
 0x46b   : > { %v986_v61 = vrot.slane %v985_v60, 1 }
 0x46d   : > { %v987_v63 = vmax.f32 %v985_v60, %v986_v61 }
 0x46f   : > { %v988_v1 = vmax.f32 %v980_v62, %v987_v63 }
 0x471   : > { %989 = vst [vmem:[#allocation2] sm:$0x1] %v988_v1 }
 0x478   : > { %v993_v2 = vld [vmem:[#allocation2] sm:$0x1] }
 0x479   : > { %v994_v5 = vpack.c.bf16 %v993_v2, %v993_v2 }
 0x47b   : > { %1242 = vmatmul.mubr.bf16.vlgmr.msra.gmra.mxu1 %v994_v5  ;;  %1283 = vmatmul.mubr.bf16.vlgmr.msra.gmra.mxu0 %v994_v5 }
 0x47c   : > { %1932 = vmatpush3.bf16.msra.mxu1 %v2257_v3  ;;  %1954 = vmatpush3.bf16.msra.mxu0 %v2258_v4  ;;  %v1363_v3 = vld [vmem:[%s2837_s9] sm:$0x1] }
 0x47d   : > { %1933 = vmatprep.subr.bf16.mxu1 %v2259_v6  ;;  %1955 = vmatprep.subr.bf16.mxu0 %v2260_v7 }
 0x480   : > { %1934 = vmatpush3.bf16.msra.mxu1 %v2261_v8  ;;  %1956 = vmatpush3.bf16.msra.mxu0 %v2262_v9 }
 0x481   : > { %1935 = vmatprep.subr.bf16.mxu1 %v2263_v10  ;;  %1957 = vmatprep.subr.bf16.mxu0 %v2264_v11 }
 0x484   : > { %1936 = vmatpush3.bf16.msra.mxu1 %v2265_v12  ;;  %1958 = vmatpush3.bf16.msra.mxu0 %v2266_v13 }
 0x485   : > { %1937 = vmatprep.subr.bf16.mxu1 %v2267_v14  ;;  %1959 = vmatprep.subr.bf16.mxu0 %v2268_v15 }
 0x488   : > { %1938 = vmatpush3.bf16.msra.mxu1 %v2269_v0  ;;  %1960 = vmatpush3.bf16.msra.mxu0 %v2270_v16 }
 0x489   : > { %1939 = vmatprep.subr.bf16.mxu1 %v2271_v17  ;;  %1961 = vmatprep.subr.bf16.mxu0 %v2272_v18 }
 0x48c   : > { %1940 = vmatpush3.bf16.msra.mxu1 %v2273_v19  ;;  %1962 = vmatpush3.bf16.msra.mxu0 %v2274_v20 }
 0x48d   : > { %1941 = vmatprep.subr.bf16.mxu1 %v2275_v21  ;;  %1963 = vmatprep.subr.bf16.mxu0 %v2276_v22 }
 0x490   : > { %1942 = vmatpush3.bf16.msra.mxu1 %v2277_v23  ;;  %1964 = vmatpush3.bf16.msra.mxu0 %v2278_v24 }
 0x491   : > { %1943 = vmatprep.subr.bf16.mxu1 %v2279_v25  ;;  %1965 = vmatprep.subr.bf16.mxu0 %v2280_v26 }
 0x494   : > { %1944 = vmatpush3.bf16.msra.mxu1 %v2281_v27  ;;  %1966 = vmatpush3.bf16.msra.mxu0 %v2282_v28 }
 0x495   : > { %1945 = vmatprep.subr.bf16.mxu1 %v2283_v29  ;;  %1967 = vmatprep.subr.bf16.mxu0 %v2284_v30 }
 0x498   : > { %1946 = vmatpush3.bf16.msra.mxu1 %v2285_v31  ;;  %1968 = vmatpush3.bf16.msra.mxu0 %v2286_v32 }
 0x53b   : > { %v1243_v44 = vpop.f32.mrf.mxu1  ;;  %v1284_v45 = vpop.f32.mrf.mxu0 }
 0x53c   : > { %v1244_v46 = vadd.f32 %v1243_v44, %v1192_v40  ;;  %v1285_v47 = vadd.f32 %v1284_v45, %v1200_v41 }
 0x53d   : > { %v1245_v48 = vpop.f32.mrf.mxu1  ;;  %v1286_v49 = vpop.f32.mrf.mxu0 }
 0x53e   : > { %v1246_v50 = vadd.f32 %v1245_v48, %v1196_v42  ;;  %v1287_v51 = vadd.f32 %v1286_v49, %v1204_v43  ;;  %v1291_v52 = vmax.f32 %v1244_v46, 0.0  ;;  %v1293_v53 = vmax.f32 %v1285_v47, 0.0 }
 0x53f   : > { %v1247_v54 = vpop.f32.mrf.mxu1  ;;  %v1288_v55 = vpop.f32.mrf.mxu0 }
 0x540   : > { %v1292_v56 = vmax.f32 %v1246_v50, 0.0  ;;  %v1294_v57 = vmax.f32 %v1287_v51, 0.0  ;;  %v1295_v62 = vpack.c.bf16 %v1291_v52, %v1291_v52  ;;  %v1297_v63 = vpack.c.bf16 %v1293_v53, %v1293_v53 }
 0x541   : > { %v1248_v58 = vpop.f32.mrf.mxu1  ;;  %v1289_v59 = vpop.f32.mrf.mxu0 }
 0x542   : > { %v1296_v60 = vpack.c.bf16 %v1292_v56, %v1292_v56  ;;  %v1298_v61 = vpack.c.bf16 %v1294_v57, %v1294_v57 }
 0x544   : > { %1588 = vmatprep.mubr.bf16.mxu1 %v1296_v60  ;;  %1628 = vmatprep.mubr.bf16.mxu0 %v1298_v61 }
 0x545   : > { %1589 = vmatmul.mubr.bf16.vlgmr.msra.gmra.mxu1 %v1295_v62  ;;  %1629 = vmatmul.mubr.bf16.vlgmr.msra.gmra.mxu0 %v1297_v63 }
 0x605   : > { %v1947_v1 = vpop.f32.mrf.mxu1  ;;  %v1969_v2 = vpop.f32.mrf.mxu0 }
 0x607   : > { %v1948_v4 = vpop.f32.mrf.mxu1  ;;  %v1970_v5 = vpop.f32.mrf.mxu0 }
 0x608   : > { %v1949_v6 = vadd.f32 %v1948_v4, %v1947_v1  ;;  %v1971_v10 = vadd.f32 %v1970_v5, %v1969_v2 }
 0x609   : > { %v1950_v7 = vpop.f32.mrf.mxu1  ;;  %v1972_v8 = vpop.f32.mrf.mxu0 }
 0x60a   : > { %v1591_v9 = vadd.f32 %v1949_v6, %v1363_v3 }
 0x60b   : > { %v1951_v11 = vpop.f32.mrf.mxu1  ;;  %v1973_v12 = vpop.f32.mrf.mxu0 }
 0x60c   : > { %v1631_v13 = vadd.f32 %v1971_v10, %v1591_v9 }
 0x60e   : > { %1636 = vst [vmem:[%s443_s27] sm:$0x1] %v1631_v13 }
 0x60f   : > { %2430 = shalt.err (!%p2427_p11)
}
 0x610   : > { %s2431_s22 = scalar_lea.hbm %s1648_s11, 16  ;;  %s2435_s17 = scalar_lea.hbm %s2838_s10, 32 }
 0x611   : > { %p2432_p4 = scmp.ne.s32.totalorder %s1648_s11, %s2431_s22  ;;  %p2436_p12 = scmp.lt.s32.totalorder %s1648_s11, %s2838_s10 }
 0x612   : > { %p2437_p0 = scmp.lt.s32.totalorder %s2435_s17, %s2431_s22 }
 0x613   : > { %p2433_p10 = pnand %p2432_p4, %p2861_p2 }
 0x614   : > { %p2438_p13 = por %p2437_p0, %p2436_p12 }
 0x615   : > { %p2434_p9 = pneg %p2433_p10 }
 0x617   : > { %p2439_p1 = pnand %p2438_p13, %p2434_p9 }
 0x619   : > { %2442 = shalt.err (!%p2439_p1)
}
 0x61a   : > { %2081 = dma.vmem_to_hbm [thread:$0]  (%p2861_p2), %s1651_s28, 16, %s1648_s11, %s1638_s24  }
 0x61b PF: > { %p2113_p3 = scmp.ge.s32.totalorder %s2505_s18, 2  ;;  %s1662_s20 = sand.u32 1, %s2485_s13  }
 0x61c   : > { %p2862_p5 = scmp.ne.s32.totalorder %s2851_s25, 0  ;;  %s1663_s19 = scalar_lea.sflag [#allocation5], %s1662_s20 }
 0x61e   : > { %p2100_p8 = pnand %p2113_p3, %p2862_p5 }
 0x620   : > { %p2101_p6 = pneg %p2100_p8 }
 0x622   : > { %2480 = dma.done.wait (%p2101_p6), %s1663_s19, 16  }
 0x623   : > { %2482 = vsyncadd (%p2101_p6), %s1663_s19, 4294967280  ;;  %s26_s18 = sadd.s32 1, %s2505_s18   ;;  %s2863_s16 = sld [smem:[#allocation17_spill]] }
 0x624   : > { %p23_p7 = scmp.ge.s32.totalorder %s26_s18, 4   ;;  %s2864_s17 = sld [smem:[#allocation18_spill]] }
 0x625   : > { %s2865_s13 = smov %s2489_s14  ;;  %s2866_s14 = smov %s2493_s15 }
 0x626   : > { %s2867_s15 = smov %s2628_s26  ;;  %25 = sbr.rel (!%p23_p7) target bundleno = 10 (0xa), region = 126 }
 0x62b   :  { %1667 = vsyncpa [#allocation4], 1 }
 0x62c   :  { %1669 = vsyncpa [#allocation4 + $0x1], 1 }
 0x62d   :  { %1670 = vsyncpa [#allocation7], 1 }
 0x62e   :  { %1671 = vsyncpa [#allocation10], 1 }
 0x62f   :  { %1672 = vsyncpa [#allocation5], 1 }
 0x630   :  { %1674 = vsyncpa [#allocation5 + $0x1], 1 }

</bundles_post_ra>
